<compile_context>
chip_gen: v5e
topology: v5e:2x2
jax: 0.10.0
libtpu: 0.0.40
codegen_flags: <defaults>
</compile_context>

<pallas_src>
import jax
import jax.numpy as jnp
from jax.experimental import pallas as pl
from jax.experimental.pallas import tpu as pltpu

EPS = 1e-5
NEG_SLOPE = 0.2
H1 = 128
H2 = 32
H_PAD = 128                      # lane-dense padded width of the final output
VMEM_LIMIT = 32 * 1024 * 1024    # explicit scoped-VMEM budget (safe on v5e/v6e/v7x)


def _leaky(x):
    return jnp.where(x >= 0, x, NEG_SLOPE * x)


def _pick_block_b(B, target=256):
    """Largest batch tile <= target that divides B; prefers 32/16/8 alignment
    (covers f32/bf16 sublane tiling). Falls back to the full batch."""
    if B <= target:
        return B
    for align in (32, 16, 8):
        if B % align:
            continue
        bt = target - (target % align)
        while bt >= align:
            if B % bt == 0:
                return bt
            bt -= align
    return B


# ---------------- pass 1: batch statistics of x (for BatchNorm1d(D)) ----------------
def stats_kernel(x_ref, sum_ref, sq_ref):
    @pl.when(pl.program_id(0) == 0)
    def _():
        sum_ref[...] = jnp.zeros_like(sum_ref)
        sq_ref[...] = jnp.zeros_like(sq_ref)
    x = x_ref[...].astype(jnp.float32)
    sum_ref[...] += jnp.sum(x, axis=0, keepdims=True)
    sq_ref[...] += jnp.sum(x * x, axis=0, keepdims=True)


# ------- pass 2: Linear(D,128)+LeakyReLU with BN1 folded in, plus stats of h1 -------
def layer1_kernel(x_ref, w1_ref, b1_ref, h1_ref, sum_ref, sq_ref):
    @pl.when(pl.program_id(0) == 0)
    def _():
        sum_ref[...] = jnp.zeros_like(sum_ref)
        sq_ref[...] = jnp.zeros_like(sq_ref)
    xb = x_ref[...].astype(jnp.bfloat16)                         # MXU input
    h = jnp.dot(xb, w1_ref[...], preferred_element_type=jnp.float32)
    h = _leaky(h + b1_ref[...])                                  # f32 math
    sum_ref[...] += jnp.sum(h, axis=0, keepdims=True)
    sq_ref[...] += jnp.sum(h * h, axis=0, keepdims=True)
    h1_ref[...] = h.astype(h1_ref.dtype)


# ---------- pass 3: Linear(128,32)+LeakyReLU with BN2 folded in (padded) ----------
def layer2_kernel(h1_ref, w2_ref, b2_ref, o_ref):
    h = jnp.dot(h1_ref[...], w2_ref[...], preferred_element_type=jnp.float32)
    o_ref[...] = _leaky(h + b2_ref[...]).astype(o_ref.dtype)


def encoder_forward(x, params, *, block_b=None):
    """x: [B, D] float32. params: dict (see init_params). Returns [B, 32] f32."""
    x = x.astype(jnp.float32)
    B, D = x.shape
    bt = block_b if block_b is not None else _pick_block_b(B)
    assert B % bt == 0, (B, bt)
    n_bt = B // bt

    cp_reduce = pltpu.CompilerParams(dimension_semantics=("arbitrary",),
                                     vmem_limit_bytes=VMEM_LIMIT)
    cp_parallel = pltpu.CompilerParams(dimension_semantics=("parallel",),
                                       vmem_limit_bytes=VMEM_LIMIT)

    # ---- pass 1: global batch stats of x ----
    sum1, sq1 = pl.pallas_call(
        stats_kernel,
        out_shape=(jax.ShapeDtypeStruct((1, D), jnp.float32),
                   jax.ShapeDtypeStruct((1, D), jnp.float32)),
        grid=(n_bt,),
        in_specs=[pl.BlockSpec((bt, D), lambda i: (i, 0))],
        out_specs=[pl.BlockSpec((1, D), lambda i: (0, 0)),
                   pl.BlockSpec((1, D), lambda i: (0, 0))],
        compiler_params=cp_reduce,
    )(x)
    mu1 = sum1 / B
    var1 = jnp.maximum(sq1 / B - mu1 * mu1, 0.0)

    # Fold BN1 (training-mode batch stats) into the first Linear.
    s1 = params["g1"] * jax.lax.rsqrt(var1 + EPS)                 # [1, D]
    shift1 = params["b1"] - mu1 * s1                              # [1, D]
    w1_eff = (params["w1"] * s1.reshape(D, 1)).astype(jnp.bfloat16)   # [D, 128]
    b1_eff = params["bias1"] + shift1 @ params["w1"]              # [1, 128] f32

    # ---- pass 2: Linear1 + LeakyReLU, accumulate stats of h1 ----
    h1, sum2, sq2 = pl.pallas_call(
        layer1_kernel,
        out_shape=(jax.ShapeDtypeStruct((B, H1), jnp.bfloat16),
                   jax.ShapeDtypeStruct((1, H1), jnp.float32),
                   jax.ShapeDtypeStruct((1, H1), jnp.float32)),
        grid=(n_bt,),
        in_specs=[pl.BlockSpec((bt, D), lambda i: (i, 0)),
                  pl.BlockSpec((D, H1), lambda i: (0, 0)),
                  pl.BlockSpec((1, H1), lambda i: (0, 0))],
        out_specs=[pl.BlockSpec((bt, H1), lambda i: (i, 0)),
                   pl.BlockSpec((1, H1), lambda i: (0, 0)),
                   pl.BlockSpec((1, H1), lambda i: (0, 0))],
        compiler_params=cp_reduce,
    )(x, w1_eff, b1_eff)
    mu2 = sum2 / B
    var2 = jnp.maximum(sq2 / B - mu2 * mu2, 0.0)

    # Fold BN2 into the second Linear. Dropout(0.2) is identity (eval).
    s2 = params["g2"] * jax.lax.rsqrt(var2 + EPS)                 # [1, 128]
    shift2 = params["b2"] - mu2 * s2                              # [1, 128]
    w2_eff = params["w2"] * s2.reshape(H1, 1)                     # [128, 32]
    b2_eff = params["bias2"] + shift2 @ params["w2"]              # [1, 32]
    # Zero-pad to 128 output lanes -> lane-dense stores in the kernel.
    w2_pad = jnp.zeros((H1, H_PAD), jnp.float32).at[:, :H2].set(w2_eff)
    w2_pad = w2_pad.astype(jnp.bfloat16)
    b2_pad = jnp.zeros((1, H_PAD), jnp.float32).at[:, :H2].set(b2_eff)

    # ---- pass 3: Linear2 + LeakyReLU (parallel over B tiles / megacore) ----
    out_pad = pl.pallas_call(
        layer2_kernel,
        out_shape=jax.ShapeDtypeStruct((B, H_PAD), jnp.float32),
        grid=(n_bt,),
        in_specs=[pl.BlockSpec((bt, H1), lambda i: (i, 0)),
                  pl.BlockSpec((H1, H_PAD), lambda i: (0, 0)),
                  pl.BlockSpec((1, H_PAD), lambda i: (0, 0))],
        out_specs=pl.BlockSpec((bt, H_PAD), lambda i: (i, 0)),
        compiler_params=cp_parallel,
    )(h1, w2_pad, b2_pad)

    return out_pad[:, :H2]


def init_params(key, input_dim):
    """Deterministic parameter init (matches module shapes; not a checkpoint)."""
    ks = jax.random.split(key, 6)
    g1 = 1.0 + 0.1 * jax.random.normal(ks[0], (1, input_dim), jnp.float32)
    b1 = 0.1 * jax.random.normal(ks[1], (1, input_dim), jnp.float32)
    g2 = 1.0 + 0.1 * jax.random.normal(ks[2], (1, H1), jnp.float32)
    b2 = 0.1 * jax.random.normal(ks[3], (1, H1), jnp.float32)
    # Linear layers stored as [in, out] (transposed vs. torch's [out, in]).
    w1 = jax.random.normal(ks[4], (input_dim, H1), jnp.float32) / jnp.sqrt(input_dim)
    bias1 = jnp.zeros((1, H1), jnp.float32)
    w2 = jax.random.normal(ks[5], (H1, H2), jnp.float32) / jnp.sqrt(H1)
    bias2 = jnp.zeros((1, H2), jnp.float32)
    return dict(g1=g1, b1=b1, w1=w1, bias1=bias1,
                g2=g2, b2=b2, w2=w2, bias2=bias2)


def encoder_ref(x, p):
    """Pure-JAX f32 reference of the module's forward (train-mode BN, eval Dropout)."""
    mu1 = jnp.mean(x, axis=0, keepdims=True)
    var1 = jnp.mean((x - mu1) ** 2, axis=0, keepdims=True)
    h = (x - mu1) / jnp.sqrt(var1 + EPS) * p["g1"] + p["b1"]
    h = h @ p["w1"] + p["bias1"]
    h = jnp.where(h >= 0, h, NEG_SLOPE * h)
    mu2 = jnp.mean(h, axis=0, keepdims=True)
    var2 = jnp.mean((h - mu2) ** 2, axis=0, keepdims=True)
    h = (h - mu2) / jnp.sqrt(var2 + EPS) * p["g2"] + p["b2"]
    h = h @ p["w2"] + p["bias2"]
    return jnp.where(h >= 0, h, NEG_SLOPE * h)


if __name__ == "__main__":
    # Small demo shapes; block_b=32 forces a 4-step grid so the cross-tile
    # BatchNorm stat accumulation path is actually exercised.
    B, D = 128, 64
    key = jax.random.PRNGKey(0)
    kx, kp = jax.random.split(key)
    x = jax.random.normal(kx, (B, D), jnp.float32)
    params = init_params(kp, D)

    fwd = jax.jit(encoder_forward, static_argnames=("block_b",))
    out = jax.block_until_ready(fwd(x, params, block_b=32))
    ref = encoder_ref(x, params)

    assert out.shape == (B, H2), out.shape
    # Tolerance reflects bf16 MXU inputs (f32 accumulation / stats / biases).
    assert jnp.allclose(out, ref, atol=5e-2, rtol=5e-2), \
        float(jnp.max(jnp.abs(out - ref)))
    print("KERNEL_OK")
</pallas_src>

<mosaic_0001>
module attributes {stable_mosaic.version = 11 : i64} {
  func.func @stats_kernel(%arg0: i32, %arg1: memref<32x64xf32, #tpu.memory_space<vmem>>, %arg2: memref<1x64xf32, #tpu.memory_space<vmem>>, %arg3: memref<1x64xf32, #tpu.memory_space<vmem>>) attributes {dimension_semantics = [#tpu.dimension_semantics<arbitrary>], iteration_bounds = array<i64: 4>, scalar_prefetch = 0 : i64, scratch_operands = 0 : i64, tpu.core_type = #tpu.core_type<tc>, window_params = [{transform_indices = @transform_0, window_bounds = array<i64: 32, 64>}, {pipeline_mode = #tpu.pipeline_mode<synchronous>, transform_indices = @transform_1, window_bounds = array<i64: 1, 64>}, {pipeline_mode = #tpu.pipeline_mode<synchronous>, transform_indices = @transform_2, window_bounds = array<i64: 1, 64>}]} {
    %c0_i32 = arith.constant 0 : i32
    %0 = arith.cmpi eq, %arg0, %c0_i32 : i32
    %1 = arith.extui %0 : i1 to i32
    %c0_i32_0 = arith.constant 0 : i32
    %2 = arith.cmpi ne, %1, %c0_i32_0 : i32
    scf.if %2 {
      %cst_11 = arith.constant 0.000000e+00 : f32
      %15 = vector.broadcast %cst_11 : f32 to vector<1x64xf32>
      %c0_12 = arith.constant 0 : index
      %c0_13 = arith.constant 0 : index
      %16 = vector.load %arg2[%c0_12, %c0_13] : memref<1x64xf32, #tpu.memory_space<vmem>>, vector<1x64xf32>
      tpu.vector_store %arg2[%c0_12, %c0_13], %15 {strides = array<i32>} : memref<1x64xf32, #tpu.memory_space<vmem>>, vector<1x64xf32>,
      %cst_14 = arith.constant 0.000000e+00 : f32
      %17 = vector.broadcast %cst_14 : f32 to vector<1x64xf32>
      %c0_15 = arith.constant 0 : index
      %c0_16 = arith.constant 0 : index
      %18 = vector.load %arg3[%c0_15, %c0_16] : memref<1x64xf32, #tpu.memory_space<vmem>>, vector<1x64xf32>
      tpu.vector_store %arg3[%c0_15, %c0_16], %17 {strides = array<i32>} : memref<1x64xf32, #tpu.memory_space<vmem>>, vector<1x64xf32>,
    } else {
    }
    %c0 = arith.constant 0 : index
    %c0_1 = arith.constant 0 : index
    %3 = vector.load %arg1[%c0, %c0_1] : memref<32x64xf32, #tpu.memory_space<vmem>>, vector<32x64xf32>
    %c0_2 = arith.constant 0 : index
    %c0_3 = arith.constant 0 : index
    %4 = vector.load %arg2[%c0_2, %c0_3] : memref<1x64xf32, #tpu.memory_space<vmem>>, vector<1x64xf32>
    %cst = arith.constant dense<0.000000e+00> : vector<64xf32>
    %5 = vector.multi_reduction <add>, %3, %cst [0] : vector<32x64xf32> to vector<64xf32>
    %6 = vector.shape_cast %5 : vector<64xf32> to vector<1x64xf32>
    %7 = arith.addf %4, %6 : vector<1x64xf32>
    %c0_4 = arith.constant 0 : index
    %c0_5 = arith.constant 0 : index
    %8 = vector.load %arg2[%c0_4, %c0_5] : memref<1x64xf32, #tpu.memory_space<vmem>>, vector<1x64xf32>
    tpu.vector_store %arg2[%c0_4, %c0_5], %7 {strides = array<i32>} : memref<1x64xf32, #tpu.memory_space<vmem>>, vector<1x64xf32>,
    %c0_6 = arith.constant 0 : index
    %c0_7 = arith.constant 0 : index
    %9 = vector.load %arg3[%c0_6, %c0_7] : memref<1x64xf32, #tpu.memory_space<vmem>>, vector<1x64xf32>
    %10 = arith.mulf %3, %3 : vector<32x64xf32>
    %cst_8 = arith.constant dense<0.000000e+00> : vector<64xf32>
    %11 = vector.multi_reduction <add>, %10, %cst_8 [0] : vector<32x64xf32> to vector<64xf32>
    %12 = vector.shape_cast %11 : vector<64xf32> to vector<1x64xf32>
    %13 = arith.addf %9, %12 : vector<1x64xf32>
    %c0_9 = arith.constant 0 : index
    %c0_10 = arith.constant 0 : index
    %14 = vector.load %arg3[%c0_9, %c0_10] : memref<1x64xf32, #tpu.memory_space<vmem>>, vector<1x64xf32>
    tpu.vector_store %arg3[%c0_9, %c0_10], %13 {strides = array<i32>} : memref<1x64xf32, #tpu.memory_space<vmem>>, vector<1x64xf32>,
    return
  }
  func.func @transform_0(%arg0: i32) -> (i32, i32) {
    %c0_i32 = arith.constant 0 : i32
    %c0_i32_0 = arith.constant 0 : i32
    return %arg0, %c0_i32 : i32, i32
  }
  func.func @transform_1(%arg0: i32) -> (i32, i32) {
    %c0_i32 = arith.constant 0 : i32
    %c0_i32_0 = arith.constant 0 : i32
    %c0_i32_1 = arith.constant 0 : i32
    return %c0_i32, %c0_i32_0 : i32, i32
  }
  func.func @transform_2(%arg0: i32) -> (i32, i32) {
    %c0_i32 = arith.constant 0 : i32
    %c0_i32_0 = arith.constant 0 : i32
    %c0_i32_1 = arith.constant 0 : i32
    return %c0_i32, %c0_i32_0 : i32, i32
  }
}

module attributes {stable_mosaic.version = 11 : i64} {
  func.func @layer1_kernel(%arg0: i32, %arg1: memref<32x64xf32, #tpu.memory_space<vmem>>, %arg2: memref<64x128xbf16, #tpu.memory_space<vmem>>, %arg3: memref<1x128xf32, #tpu.memory_space<vmem>>, %arg4: memref<32x128xbf16, #tpu.memory_space<vmem>>, %arg5: memref<1x128xf32, #tpu.memory_space<vmem>>, %arg6: memref<1x128xf32, #tpu.memory_space<vmem>>) attributes {dimension_semantics = [#tpu.dimension_semantics<arbitrary>], iteration_bounds = array<i64: 4>, scalar_prefetch = 0 : i64, scratch_operands = 0 : i64, tpu.core_type = #tpu.core_type<tc>, window_params = [{transform_indices = @transform_0, window_bounds = array<i64: 32, 64>}, {pipeline_mode = #tpu.pipeline_mode<synchronous>, transform_indices = @transform_1, window_bounds = array<i64: 64, 128>}, {pipeline_mode = #tpu.pipeline_mode<synchronous>, transform_indices = @transform_2, window_bounds = array<i64: 1, 128>}, {transform_indices = @transform_3, window_bounds = array<i64: 32, 128>}, {pipeline_mode = #tpu.pipeline_mode<synchronous>, transform_indices = @transform_4, window_bounds = array<i64: 1, 128>}, {pipeline_mode = #tpu.pipeline_mode<synchronous>, transform_indices = @transform_5, window_bounds = array<i64: 1, 128>}]} {
    %c0_i32 = arith.constant 0 : i32
    %0 = arith.cmpi eq, %arg0, %c0_i32 : i32
    %1 = arith.extui %0 : i1 to i32
    %c0_i32_0 = arith.constant 0 : i32
    %2 = arith.cmpi ne, %1, %c0_i32_0 : i32
    scf.if %2 {
      %cst_20 = arith.constant 0.000000e+00 : f32
      %28 = vector.broadcast %cst_20 : f32 to vector<1x128xf32>
      %c0_21 = arith.constant 0 : index
      %c0_22 = arith.constant 0 : index
      %29 = vector.load %arg5[%c0_21, %c0_22] : memref<1x128xf32, #tpu.memory_space<vmem>>, vector<1x128xf32>
      tpu.vector_store %arg5[%c0_21, %c0_22], %28 {strides = array<i32>} : memref<1x128xf32, #tpu.memory_space<vmem>>, vector<1x128xf32>,
      %cst_23 = arith.constant 0.000000e+00 : f32
      %30 = vector.broadcast %cst_23 : f32 to vector<1x128xf32>
      %c0_24 = arith.constant 0 : index
      %c0_25 = arith.constant 0 : index
      %31 = vector.load %arg6[%c0_24, %c0_25] : memref<1x128xf32, #tpu.memory_space<vmem>>, vector<1x128xf32>
      tpu.vector_store %arg6[%c0_24, %c0_25], %30 {strides = array<i32>} : memref<1x128xf32, #tpu.memory_space<vmem>>, vector<1x128xf32>,
    } else {
    }
    %c0 = arith.constant 0 : index
    %c0_1 = arith.constant 0 : index
    %3 = vector.load %arg1[%c0, %c0_1] : memref<32x64xf32, #tpu.memory_space<vmem>>, vector<32x64xf32>
    %4 = arith.truncf %3 : vector<32x64xf32> to vector<32x64xbf16>
    %c0_2 = arith.constant 0 : index
    %c0_3 = arith.constant 0 : index
    %5 = vector.load %arg2[%c0_2, %c0_3] : memref<64x128xbf16, #tpu.memory_space<vmem>>, vector<64x128xbf16>
    %cst = arith.constant dense<0.000000e+00> : vector<32x128xf32>
    %6 = tpu.matmul %4, %5, %cst {dimension_numbers = #tpu.dot_dimension_numbers<[1], [0], [0], [1], [0, 0, 1, 1], [], []>} : vector<32x64xbf16>, vector<64x128xbf16>, vector<32x128xf32> -> vector<32x128xf32>
    %c0_4 = arith.constant 0 : index
    %c0_5 = arith.constant 0 : index
    %7 = vector.load %arg3[%c0_4, %c0_5] : memref<1x128xf32, #tpu.memory_space<vmem>>, vector<1x128xf32>
    %8 = vector.broadcast %7 : vector<1x128xf32> to vector<32x128xf32>
    %9 = arith.addf %6, %8 : vector<32x128xf32>
    %cst_6 = arith.constant 0.000000e+00 : f32
    %10 = vector.broadcast %cst_6 : f32 to vector<32x128xf32>
    %11 = arith.cmpf oge, %9, %10 : vector<32x128xf32>
    %cst_7 = arith.constant 2.000000e-01 : f32
    %12 = vector.broadcast %cst_7 : f32 to vector<32x128xf32>
    %13 = arith.mulf %12, %9 : vector<32x128xf32>
    %14 = arith.select %11, %9, %13 : vector<32x128xi1>, vector<32x128xf32>
    %c0_8 = arith.constant 0 : index
    %c0_9 = arith.constant 0 : index
    %15 = vector.load %arg5[%c0_8, %c0_9] : memref<1x128xf32, #tpu.memory_space<vmem>>, vector<1x128xf32>
    %cst_10 = arith.constant dense<0.000000e+00> : vector<128xf32>
    %16 = vector.multi_reduction <add>, %14, %cst_10 [0] : vector<32x128xf32> to vector<128xf32>
    %17 = vector.shape_cast %16 : vector<128xf32> to vector<1x128xf32>
    %18 = arith.addf %15, %17 : vector<1x128xf32>
    %c0_11 = arith.constant 0 : index
    %c0_12 = arith.constant 0 : index
    %19 = vector.load %arg5[%c0_11, %c0_12] : memref<1x128xf32, #tpu.memory_space<vmem>>, vector<1x128xf32>
    tpu.vector_store %arg5[%c0_11, %c0_12], %18 {strides = array<i32>} : memref<1x128xf32, #tpu.memory_space<vmem>>, vector<1x128xf32>,
    %c0_13 = arith.constant 0 : index
    %c0_14 = arith.constant 0 : index
    %20 = vector.load %arg6[%c0_13, %c0_14] : memref<1x128xf32, #tpu.memory_space<vmem>>, vector<1x128xf32>
    %21 = arith.mulf %14, %14 : vector<32x128xf32>
    %cst_15 = arith.constant dense<0.000000e+00> : vector<128xf32>
    %22 = vector.multi_reduction <add>, %21, %cst_15 [0] : vector<32x128xf32> to vector<128xf32>
    %23 = vector.shape_cast %22 : vector<128xf32> to vector<1x128xf32>
    %24 = arith.addf %20, %23 : vector<1x128xf32>
    %c0_16 = arith.constant 0 : index
    %c0_17 = arith.constant 0 : index
    %25 = vector.load %arg6[%c0_16, %c0_17] : memref<1x128xf32, #tpu.memory_space<vmem>>, vector<1x128xf32>
    tpu.vector_store %arg6[%c0_16, %c0_17], %24 {strides = array<i32>} : memref<1x128xf32, #tpu.memory_space<vmem>>, vector<1x128xf32>,
    %26 = arith.truncf %14 : vector<32x128xf32> to vector<32x128xbf16>
    %c0_18 = arith.constant 0 : index
    %c0_19 = arith.constant 0 : index
    %27 = vector.load %arg4[%c0_18, %c0_19] : memref<32x128xbf16, #tpu.memory_space<vmem>>, vector<32x128xbf16>
    tpu.vector_store %arg4[%c0_18, %c0_19], %26 {strides = array<i32>} : memref<32x128xbf16, #tpu.memory_space<vmem>>, vector<32x128xbf16>,
    return
  }
  func.func @transform_0(%arg0: i32) -> (i32, i32) {
    %c0_i32 = arith.constant 0 : i32
    %c0_i32_0 = arith.constant 0 : i32
    return %arg0, %c0_i32 : i32, i32
  }
  func.func @transform_1(%arg0: i32) -> (i32, i32) {
    %c0_i32 = arith.constant 0 : i32
    %c0_i32_0 = arith.constant 0 : i32
    %c0_i32_1 = arith.constant 0 : i32
    return %c0_i32, %c0_i32_0 : i32, i32
  }
  func.func @transform_2(%arg0: i32) -> (i32, i32) {
    %c0_i32 = arith.constant 0 : i32
    %c0_i32_0 = arith.constant 0 : i32
    %c0_i32_1 = arith.constant 0 : i32
    return %c0_i32, %c0_i32_0 : i32, i32
  }
  func.func @transform_3(%arg0: i32) -> (i32, i32) {
    %c0_i32 = arith.constant 0 : i32
    %c0_i32_0 = arith.constant 0 : i32
    return %arg0, %c0_i32 : i32, i32
  }
  func.func @transform_4(%arg0: i32) -> (i32, i32) {
    %c0_i32 = arith.constant 0 : i32
    %c0_i32_0 = arith.constant 0 : i32
    %c0_i32_1 = arith.constant 0 : i32
    return %c0_i32, %c0_i32_0 : i32, i32
  }
  func.func @transform_5(%arg0: i32) -> (i32, i32) {
    %c0_i32 = arith.constant 0 : i32
    %c0_i32_0 = arith.constant 0 : i32
    %c0_i32_1 = arith.constant 0 : i32
    return %c0_i32, %c0_i32_0 : i32, i32
  }
}

module attributes {stable_mosaic.version = 11 : i64} {
  func.func @layer2_kernel(%arg0: i32, %arg1: memref<32x128xbf16, #tpu.memory_space<vmem>>, %arg2: memref<128x128xbf16, #tpu.memory_space<vmem>>, %arg3: memref<1x128xf32, #tpu.memory_space<vmem>>, %arg4: memref<32x128xf32, #tpu.memory_space<vmem>>) attributes {dimension_semantics = [#tpu.dimension_semantics<parallel>], iteration_bounds = array<i64: 4>, scalar_prefetch = 0 : i64, scratch_operands = 0 : i64, tpu.core_type = #tpu.core_type<tc>, window_params = [{transform_indices = @transform_0, window_bounds = array<i64: 32, 128>}, {pipeline_mode = #tpu.pipeline_mode<synchronous>, transform_indices = @transform_1, window_bounds = array<i64: 128, 128>}, {pipeline_mode = #tpu.pipeline_mode<synchronous>, transform_indices = @transform_2, window_bounds = array<i64: 1, 128>}, {transform_indices = @transform_3, window_bounds = array<i64: 32, 128>}]} {
    %c0 = arith.constant 0 : index
    %c0_0 = arith.constant 0 : index
    %0 = vector.load %arg1[%c0, %c0_0] : memref<32x128xbf16, #tpu.memory_space<vmem>>, vector<32x128xbf16>
    %c0_1 = arith.constant 0 : index
    %c0_2 = arith.constant 0 : index
    %1 = vector.load %arg2[%c0_1, %c0_2] : memref<128x128xbf16, #tpu.memory_space<vmem>>, vector<128x128xbf16>
    %cst = arith.constant dense<0.000000e+00> : vector<32x128xf32>
    %2 = tpu.matmul %0, %1, %cst {dimension_numbers = #tpu.dot_dimension_numbers<[1], [0], [0], [1], [0, 0, 1, 1], [], []>} : vector<32x128xbf16>, vector<128x128xbf16>, vector<32x128xf32> -> vector<32x128xf32>
    %c0_3 = arith.constant 0 : index
    %c0_4 = arith.constant 0 : index
    %3 = vector.load %arg3[%c0_3, %c0_4] : memref<1x128xf32, #tpu.memory_space<vmem>>, vector<1x128xf32>
    %4 = vector.broadcast %3 : vector<1x128xf32> to vector<32x128xf32>
    %5 = arith.addf %2, %4 : vector<32x128xf32>
    %cst_5 = arith.constant 0.000000e+00 : f32
    %6 = vector.broadcast %cst_5 : f32 to vector<32x128xf32>
    %7 = arith.cmpf oge, %5, %6 : vector<32x128xf32>
    %cst_6 = arith.constant 2.000000e-01 : f32
    %8 = vector.broadcast %cst_6 : f32 to vector<32x128xf32>
    %9 = arith.mulf %8, %5 : vector<32x128xf32>
    %10 = arith.select %7, %5, %9 : vector<32x128xi1>, vector<32x128xf32>
    %c0_7 = arith.constant 0 : index
    %c0_8 = arith.constant 0 : index
    %11 = vector.load %arg4[%c0_7, %c0_8] : memref<32x128xf32, #tpu.memory_space<vmem>>, vector<32x128xf32>
    tpu.vector_store %arg4[%c0_7, %c0_8], %10 {strides = array<i32>} : memref<32x128xf32, #tpu.memory_space<vmem>>, vector<32x128xf32>,
    return
  }
  func.func @transform_0(%arg0: i32) -> (i32, i32) {
    %c0_i32 = arith.constant 0 : i32
    %c0_i32_0 = arith.constant 0 : i32
    return %arg0, %c0_i32 : i32, i32
  }
  func.func @transform_1(%arg0: i32) -> (i32, i32) {
    %c0_i32 = arith.constant 0 : i32
    %c0_i32_0 = arith.constant 0 : i32
    %c0_i32_1 = arith.constant 0 : i32
    return %c0_i32, %c0_i32_0 : i32, i32
  }
  func.func @transform_2(%arg0: i32) -> (i32, i32) {
    %c0_i32 = arith.constant 0 : i32
    %c0_i32_0 = arith.constant 0 : i32
    %c0_i32_1 = arith.constant 0 : i32
    return %c0_i32, %c0_i32_0 : i32, i32
  }
  func.func @transform_3(%arg0: i32) -> (i32, i32) {
    %c0_i32 = arith.constant 0 : i32
    %c0_i32_0 = arith.constant 0 : i32
    return %arg0, %c0_i32 : i32, i32
  }
}

</mosaic_0001>

<bundles_post_ra>
// kernel: encoder_forward.3
= control target key start
LH: loop header
LB: loop body
LE: loop exit
PB: predicated region body
PF: predicated region fallthrough
CT: control target
= control target key end

     0   :  { %s254_s9 = smov 0   ;;  %s294_s0 = inlined_call_operand.vmem [shape: f32[128,64], index: 0, kind: input, shape index: {}]   ;;  %s295_s1 = inlined_call_operand.vmem [shape: f32[1,64], index: 1, kind: output, shape index: {0}]   ;;  %s296_s2 = inlined_call_operand.vmem [shape: f32[1,64], index: 2, kind: output, shape index: {1}]  }
   0x1 LB: > { %s212_s10 = sadd.s32 4294967295, %s236_s9   ;;  %p215_p0 = scmp.ge.s32.totalorder %s236_s9, 1  ;;  %s236_s9 = sphi %s254_s9, %s13_s9  }
   0x2   : > { %p106_p1 = scmp.lt.s32.totalorder %s236_s9, 5 }
   0x4   : > { %p107_p2 = pnand %p215_p0, %p106_p1 }
   0x5   : > { %s216_s11 = sshll.u32 (!%p107_p2), %s212_s10, 2  ;;  %p218_p4 = scmp.ne.s32.totalorder (!%p107_p2), %s212_s10, 0 }
   0x6   : > { %110 = sbr.rel (%p107_p2) target bundleno = 45 (0x2d), region = 24  ;;  %p124_p3 = scmp.lt.s32.totalorder (!%p107_p2), %s216_s11, 15 }
   0xb   : > { %s298_s11 = smov (!%p124_p3, %s216_s11), 15  ;;  %132 = sbr.rel (%p218_p4) target bundleno = 19 (0x13), region = 28 }
   0xc   : > { %s217_s12 = sshll.u32 %s298_s11, 3 }
   0xd   : > { %s127_s15 = scalar_lea.vmem %s294_s0, %s217_s12 }
  0x10   : > { %vm133_vm0 = vcmask 516096   ;;  %v238_v0 = vmov 0.0  }
  0x11   : > { %134 = vst.msk [vmem:[%s295_s1] sm:$0x1] %vm133_vm0, %v238_v0 }
  0x12   : > { %135 = vst.msk [vmem:[%s296_s2] sm:$0x1] %vm133_vm0, %v238_v0 }
  0x13 PF: > { %v136_v1 = vld [vmem:[%s127_s15] sm:$0xff]  ;;  %v137_v2 = vld [vmem:[%s127_s15 + $0x8] sm:$0xff]  ;;  %v138_v3 = vld [vmem:[%s127_s15 + $0x10] sm:$0xff]  ;;  %vm141_vm1 = vcmask 523264   ;;  %vm156_vm2 = vcmask 516096  }
  0x14   : > { %v139_v4 = vld [vmem:[%s127_s15 + $0x18] sm:$0xff]  ;;  %v142_v5 = vsel %vm141_vm1, %v136_v1, 0.0  ;;  %v143_v6 = vsel %vm141_vm1, %v137_v2, 0.0  ;;  %v145_v7 = vsel %vm141_vm1, %v138_v3, 0.0  ;;  %v159_v8 = vmul.f32 %v136_v1, %v136_v1 }
  0x15   : > { %v144_v9 = vadd.f32 %v143_v6, %v142_v5  ;;  %v160_v10 = vmul.f32 %v137_v2, %v137_v2  ;;  %v161_v11 = vmul.f32 %v138_v3, %v138_v3  ;;  %v147_v12 = vsel %vm141_vm1, %v139_v4, 0.0 }
  0x16   : > { %v162_v13 = vmul.f32 %v139_v4, %v139_v4  ;;  %v163_v14 = vsel %vm141_vm1, %v159_v8, 0.0 }
  0x17   : > { %v146_v15 = vadd.f32 %v145_v7, %v144_v9  ;;  %v164_v16 = vsel %vm141_vm1, %v160_v10, 0.0  ;;  %v166_v17 = vsel %vm141_vm1, %v161_v11, 0.0 }
  0x18   : > { %v165_v18 = vadd.f32 %v164_v16, %v163_v14  ;;  %v168_v20 = vsel %vm141_vm1, %v162_v13, 0.0  ;;  %v140_v31 = vld [vmem:[%s295_s1] sm:$0x1] }
  0x19   : > { %v148_v19 = vadd.f32 %v147_v12, %v146_v15  ;;  %v158_v36 = vld [vmem:[%s296_s2] sm:$0x1] }
  0x1a   : > { %v167_v21 = vadd.f32 %v166_v17, %v165_v18 }
  0x1b   : > { %v149_v22 = vrot.slane %v148_v19, 4 }
  0x1c   : > { %v169_v23 = vadd.f32 %v168_v20, %v167_v21 }
  0x1d   : > { %v150_v24 = vadd.f32 %v149_v22, %v148_v19 }
  0x1e   : > { %v170_v25 = vrot.slane %v169_v23, 4 }
  0x1f   : > { %v151_v26 = vrot.slane %v150_v24, 2 }
  0x20   : > { %v171_v27 = vadd.f32 %v170_v25, %v169_v23 }
  0x21   : > { %v152_v28 = vadd.f32 %v151_v26, %v150_v24 }
  0x22   : > { %v172_v29 = vrot.slane %v171_v27, 2 }
  0x23   : > { %v153_v30 = vrot.slane %v152_v28, 1 }
  0x24   : > { %v173_v32 = vadd.f32 %v172_v29, %v171_v27 }
  0x25   : > { %v154_v33 = vadd.f32 %v153_v30, %v152_v28 }
  0x26   : > { %v174_v34 = vrot.slane %v173_v32, 1 }
  0x27   : > { %v155_v35 = vadd.f32 %v154_v33, %v140_v31 }
  0x28   : > { %v175_v37 = vadd.f32 %v174_v34, %v173_v32 }
  0x29   : > { %157 = vst.msk [vmem:[%s295_s1] sm:$0x1] %vm156_vm2, %v155_v35 }
  0x2a   : > { %v176_v38 = vadd.f32 %v175_v37, %v158_v36 }
  0x2c   : > { %177 = vst.msk [vmem:[%s296_s2] sm:$0x1] %vm156_vm2, %v176_v38 }
  0x2d PF: > { %s13_s9 = sadd.s32 1, %s236_s9  }
  0x2e   : > { %p10_p5 = scmp.ge.s32.totalorder %s13_s9, 6  }
  0x30   :  { %12 = sbr.rel (!%p10_p5) target bundleno = 1 (0x1), region = 62 }

// kernel: encoder_forward.5
= control target key start
LH: loop header
LB: loop body
LE: loop exit
PB: predicated region body
PF: predicated region fallthrough
CT: control target
= control target key end

     0   :  { %s455_s12 = smov 0   ;;  %s499_s0 = inlined_call_operand.vmem [shape: bf16[128,128], index: 0, kind: input, shape index: {}]   ;;  %s500_s1 = inlined_call_operand.vmem [shape: bf16[128,128], index: 1, kind: input, shape index: {}]   ;;  %s501_s2 = inlined_call_operand.vmem [shape: f32[1,128], index: 2, kind: input, shape index: {}]   ;;  %s502_s3 = inlined_call_operand.vmem [shape: f32[128,128], index: 3, kind: output, shape index: {}]  }
   0x1 LB: > { %s349_s13 = sadd.s32 4294967295, %s433_s12   ;;  %p353_p0 = scmp.ge.s32.totalorder %s433_s12, 1  ;;  %s433_s12 = sphi %s455_s12, %s13_s12  }
   0x2   : > { %p138_p1 = scmp.lt.s32.totalorder %s433_s12, 5 }
   0x4   : > { %p139_p2 = pnand %p353_p0, %p138_p1 }
   0x5   : > { %s354_s22 = sshll.u32 (!%p139_p2), %s349_s13, 2 }
   0x6   : > { %142 = sbr.rel (%p139_p2) target bundleno = 184 (0xb8), region = 32  ;;  %p163_p3 = scmp.lt.s32.totalorder (!%p139_p2), %s354_s22, 15 }
   0xb   : > { %v409_v0 = vld [vmem:[%s500_s1 + $0x38] sm:$0xff]  ;;  %v408_v1 = vld [vmem:[%s500_s1 + $0x30] sm:$0xff]  ;;  %v407_v2 = vld [vmem:[%s500_s1 + $0x28] sm:$0xff]  ;;  %s504_s22 = smov (!%p163_p3, %s354_s22), 15 }
   0xc   : > { %258 = vmatpush.bf16.msra.mxu0 %v409_v0  ;;  %410 = vmatpush.bf16.msra.mxu1 %v409_v0  ;;  %v406_v3 = vld [vmem:[%s500_s1 + $0x20] sm:$0xff]  ;;  %v405_v4 = vld [vmem:[%s500_s1 + $0x18] sm:$0xff]  ;;  %v404_v5 = vld [vmem:[%s500_s1 + $0x10] sm:$0xff]  ;;  %s355_s29 = sshll.u32 %s504_s22, 2  ;;  %s357_s10 = sshll.u32 %s504_s22, 3 }
   0xd   : > { %v403_v6 = vld [vmem:[%s500_s1 + $0x8] sm:$0xff]  ;;  %v402_v7 = vld [vmem:[%s500_s1] sm:$0xff]  ;;  %s166_s7 = scalar_lea.vmem %s499_s0, %s355_s29  ;;  %s172_s14 = scalar_lea.vmem %s502_s3, %s357_s10 }
   0xe   : > { %v400_v8 = vld [vmem:[%s166_s7] sm:$0xff]  ;;  %v401_v9 = vld [vmem:[%s166_s7 + $0x8] sm:$0xff] }
   0xf   : > { %v426_v10 = vld [vmem:[%s501_s2] ss:$0 sm:$0xff] }
  0x10   : > { %259 = vmatpush.bf16.msra.mxu0 %v408_v1  ;;  %411 = vmatpush.bf16.msra.mxu1 %v408_v1 }
  0x14   : > { %260 = vmatpush.bf16.msra.mxu0 %v407_v2  ;;  %412 = vmatpush.bf16.msra.mxu1 %v407_v2 }
  0x18   : > { %261 = vmatpush.bf16.msra.mxu0 %v406_v3  ;;  %413 = vmatpush.bf16.msra.mxu1 %v406_v3 }
  0x1c   : > { %262 = vmatpush.bf16.msra.mxu0 %v405_v4  ;;  %414 = vmatpush.bf16.msra.mxu1 %v405_v4 }
  0x20   : > { %263 = vmatpush.bf16.msra.mxu0 %v404_v5  ;;  %415 = vmatpush.bf16.msra.mxu1 %v404_v5 }
  0x24   : > { %264 = vmatpush.bf16.msra.mxu0 %v403_v6  ;;  %416 = vmatpush.bf16.msra.mxu1 %v403_v6 }
  0x28   : > { %265 = vmatpush.bf16.msra.mxu0 %v402_v7  ;;  %417 = vmatpush.bf16.msra.mxu1 %v402_v7 }
  0x2b   : > { %266 = vmatmul.bf16.vlgmr.msra.gmra.mxu0 %v400_v8  ;;  %271 = vmatmul.bf16.vlgmr.msra.gmra.mxu1 %v401_v9 }
  0xa8   : > { %v267_v11 = vpop.f32.mrf.mxu0  ;;  %v272_v12 = vpop.f32.mrf.mxu1 }
  0xa9   : > { %v268_v13 = vadd.f32 %v426_v10, %v267_v11  ;;  %v273_v14 = vadd.f32 %v426_v10, %v272_v12 }
  0xab   : > { %vm277_vm0 = vcmp.ge.f32.partialorder %v268_v13, 0.0  ;;  %v281_v15 = vmul.f32 0.2, %v268_v13  ;;  %vm279_vm1 = vcmp.ge.f32.partialorder %v273_v14, 0.0  ;;  %v283_v16 = vmul.f32 0.2, %v273_v14 }
  0xad   : > { %v285_v17 = vsel %vm277_vm0, %v268_v13, %v281_v15  ;;  %v287_v18 = vsel %vm279_vm1, %v273_v14, %v283_v16 }
  0xae   : > { %289 = vst [vmem:[%s172_s14] sm:$0xff] %v285_v17 }
  0xaf   : > { %291 = vst [vmem:[%s172_s14 + $0x10] sm:$0xff] %v287_v18 }
  0xb0   : > { %v269_v19 = vpop.f32.mrf.mxu0  ;;  %v274_v20 = vpop.f32.mrf.mxu1 }
  0xb1   : > { %v270_v21 = vadd.f32 %v426_v10, %v269_v19  ;;  %v275_v22 = vadd.f32 %v426_v10, %v274_v20 }
  0xb3   : > { %vm278_vm2 = vcmp.ge.f32.partialorder %v270_v21, 0.0  ;;  %v282_v23 = vmul.f32 0.2, %v270_v21  ;;  %vm280_vm3 = vcmp.ge.f32.partialorder %v275_v22, 0.0  ;;  %v284_v24 = vmul.f32 0.2, %v275_v22 }
  0xb5   : > { %v286_v25 = vsel %vm278_vm2, %v270_v21, %v282_v23  ;;  %v288_v26 = vsel %vm280_vm3, %v275_v22, %v284_v24 }
  0xb6   : > { %290 = vst [vmem:[%s172_s14 + $0x8] sm:$0xff] %v286_v25 }
  0xb7   : > { %292 = vst [vmem:[%s172_s14 + $0x18] sm:$0xff] %v288_v26 }
  0xb8 PF: > { %s13_s12 = sadd.s32 1, %s433_s12  }
  0xb9   : > { %p10_p4 = scmp.ge.s32.totalorder %s13_s12, 6  }
  0xbb   :  { %12 = sbr.rel (!%p10_p4) target bundleno = 1 (0x1), region = 62 }

// kernel: encoder_forward.4
= control target key start
LH: loop header
LB: loop body
LE: loop exit
PB: predicated region body
PF: predicated region fallthrough
CT: control target
= control target key end

     0   :  { %s512_s18 = smov 0   ;;  %s566_s0 = inlined_call_operand.vmem [shape: f32[128,64], index: 0, kind: input, shape index: {}]   ;;  %s567_s1 = inlined_call_operand.vmem [shape: bf16[64,128], index: 1, kind: input, shape index: {}]   ;;  %s568_s2 = inlined_call_operand.vmem [shape: f32[1,128], index: 2, kind: input, shape index: {}]   ;;  %s569_s3 = inlined_call_operand.vmem [shape: bf16[128,128], index: 3, kind: output, shape index: {0}]   ;;  %s570_s4 = inlined_call_operand.vmem [shape: f32[1,128], index: 4, kind: output, shape index: {1}]   ;;  %s571_s5 = inlined_call_operand.vmem [shape: f32[1,128], index: 5, kind: output, shape index: {2}]  }
   0x1 LB: > { %s414_s19 = sadd.s32 4294967295, %s479_s18   ;;  %p418_p0 = scmp.ge.s32.totalorder %s479_s18, 1  ;;  %s479_s18 = sphi %s512_s18, %s16_s18  }
   0x2   : > { %p183_p1 = scmp.lt.s32.totalorder %s479_s18, 5 }
   0x4   : > { %p184_p2 = pnand %p418_p0, %p183_p1 }
   0x5   : > { %s419_s20 = sshll.u32 (!%p184_p2), %s414_s19, 2  ;;  %p423_p4 = scmp.ne.s32.totalorder (!%p184_p2), %s414_s19, 0 }
   0x6   : > { %187 = sbr.rel (%p184_p2) target bundleno = 197 (0xc5), region = 32  ;;  %p212_p3 = scmp.lt.s32.totalorder (!%p184_p2), %s419_s20, 15 }
   0xb   : > { %s573_s20 = smov (!%p212_p3, %s419_s20), 15  ;;  %227 = sbr.rel (%p423_p4) target bundleno = 19 (0x13), region = 36 }
   0xc   : > { %s420_s21 = sshll.u32 %s573_s20, 3  ;;  %s422_s22 = sshll.u32 %s573_s20, 2 }
   0xd   : > { %s215_s25 = scalar_lea.vmem %s566_s0, %s420_s21  ;;  %s526_s28 = scalar_lea.vmem %s569_s3, %s422_s22 }
  0x10   : > { %v481_v0 = vmov 0.0  }
  0x11   : > { %228 = vst [vmem:[%s570_s4] sm:$0x1] %v481_v0 }
  0x12   : > { %229 = vst [vmem:[%s571_s5] sm:$0x1] %v481_v0 }
  0x13 PF: > { %v447_v1 = vld [vmem:[%s567_s1 + $0x18] sm:$0xff]  ;;  %v446_v2 = vld [vmem:[%s567_s1 + $0x10] sm:$0xff]  ;;  %v445_v3 = vld [vmem:[%s567_s1 + $0x8] sm:$0xff]  ;;  %vm272_vm0 = vcmask 523264  }
  0x14   : > { %283 = vmatpush.bf16.msra.mxu0 %v447_v1  ;;  %459 = vmatpush.bf16.msra.mxu1 %v447_v1  ;;  %v444_v4 = vld [vmem:[%s567_s1] sm:$0xff]  ;;  %v231_v6 = vld [vmem:[%s215_s25 + $0x8] sm:$0xff]  ;;  %v232_v7 = vld [vmem:[%s215_s25 + $0x10] sm:$0xff] }
  0x15   : > { %v230_v5 = vld [vmem:[%s215_s25] sm:$0xff]  ;;  %v233_v8 = vld [vmem:[%s215_s25 + $0x18] sm:$0xff] }
  0x16   : > { %v234_v9 = vpack.c.bf16 %v231_v6, %v230_v5  ;;  %v235_v10 = vpack.c.bf16 %v233_v8, %v232_v7  ;;  %v472_v11 = vld [vmem:[%s568_s2] ss:$0 sm:$0xff] }
  0x18   : > { %284 = vmatpush.bf16.msra.mxu0 %v446_v2  ;;  %460 = vmatpush.bf16.msra.mxu1 %v446_v2  ;;  %v310_v49 = vld [vmem:[%s570_s4] sm:$0x1] }
  0x19   : > { %v322_v52 = vld [vmem:[%s571_s5] sm:$0x1] }
  0x1c   : > { %285 = vmatpush.bf16.msra.mxu0 %v445_v3  ;;  %461 = vmatpush.bf16.msra.mxu1 %v445_v3 }
  0x20   : > { %286 = vmatpush.bf16.msra.mxu0 %v444_v4  ;;  %462 = vmatpush.bf16.msra.mxu1 %v444_v4 }
  0x23   : > { %440 = vmatmul.msk.bf16.vlgmr.msra.gmra.mxu0 %vm272_vm0, %v234_v9  ;;  %441 = vmatmul.msk.bf16.vlgmr.msra.gmra.mxu1 %vm272_vm0, %v235_v10 }
  0xa0   : > { %v288_v12 = vpop.f32.mrf.mxu0  ;;  %v293_v13 = vpop.f32.mrf.mxu1 }
  0xa1   : > { %v289_v14 = vadd.f32 %v472_v11, %v288_v12  ;;  %v294_v15 = vadd.f32 %v472_v11, %v293_v13 }
  0xa3   : > { %v302_v16 = vmul.f32 0.2, %v289_v14  ;;  %vm298_vm1 = vcmp.ge.f32.partialorder %v289_v14, 0.0  ;;  %v304_v19 = vmul.f32 0.2, %v294_v15  ;;  %vm300_vm2 = vcmp.ge.f32.partialorder %v294_v15, 0.0 }
  0xa5   : > { %v306_v22 = vsel %vm298_vm1, %v289_v14, %v302_v16  ;;  %v308_v25 = vsel %vm300_vm2, %v294_v15, %v304_v19 }
  0xa6   : > { %v323_v28 = vmul.f32 %v306_v22, %v306_v22  ;;  %v325_v33 = vmul.f32 %v308_v25, %v308_v25 }
  0xa8   : > { %v290_v17 = vpop.f32.mrf.mxu0  ;;  %v295_v18 = vpop.f32.mrf.mxu1 }
  0xa9   : > { %v291_v20 = vadd.f32 %v472_v11, %v290_v17  ;;  %v296_v21 = vadd.f32 %v472_v11, %v295_v18 }
  0xab   : > { %vm299_vm3 = vcmp.ge.f32.partialorder %v291_v20, 0.0  ;;  %v303_v23 = vmul.f32 0.2, %v291_v20  ;;  %vm301_vm4 = vcmp.ge.f32.partialorder %v296_v21, 0.0  ;;  %v305_v24 = vmul.f32 0.2, %v296_v21 }
  0xad   : > { %v307_v26 = vsel %vm299_vm3, %v291_v20, %v303_v23  ;;  %v309_v27 = vsel %vm301_vm4, %v296_v21, %v305_v24 }
  0xae   : > { %v311_v29 = vadd.f32 %v307_v26, %v306_v22  ;;  %v324_v30 = vmul.f32 %v307_v26, %v307_v26  ;;  %v451_v31 = vpack.c.bf16 %v307_v26, %v306_v22  ;;  %v456_v32 = vpack.c.bf16 %v309_v27, %v308_v25 }
  0xaf   : > { %v326_v37 = vmul.f32 %v309_v27, %v309_v27 }
  0xb0   : > { %v327_v34 = vadd.f32 %v324_v30, %v323_v28  ;;  %452 = vst [vmem:[%s526_s28] sm:$0xff] %v451_v31   ;;  %v312_v35 = vadd.f32 %v311_v29, %v308_v25 }
  0xb1   : > { %458 = vst [vmem:[%s526_s28 + $0x8] sm:$0xff] %v456_v32  }
  0xb2   : > { %v313_v36 = vadd.f32 %v312_v35, %v309_v27  ;;  %v328_v38 = vadd.f32 %v327_v34, %v325_v33 }
  0xb4   : > { %v314_v39 = vrot.slane %v313_v36, 4  ;;  %v329_v40 = vadd.f32 %v328_v38, %v326_v37 }
  0xb6   : > { %v315_v41 = vadd.f32 %v314_v39, %v313_v36  ;;  %v330_v42 = vrot.slane %v329_v40, 4 }
  0xb8   : > { %v316_v43 = vrot.slane %v315_v41, 2  ;;  %v331_v44 = vadd.f32 %v330_v42, %v329_v40 }
  0xba   : > { %v317_v45 = vadd.f32 %v316_v43, %v315_v41  ;;  %v332_v46 = vrot.slane %v331_v44, 2 }
  0xbc   : > { %v318_v47 = vrot.slane %v317_v45, 1  ;;  %v333_v48 = vadd.f32 %v332_v46, %v331_v44 }
  0xbe   : > { %v319_v50 = vadd.f32 %v318_v47, %v317_v45  ;;  %v334_v51 = vrot.slane %v333_v48, 1 }
  0xc0   : > { %v320_v53 = vadd.f32 %v319_v50, %v310_v49  ;;  %v335_v54 = vadd.f32 %v334_v51, %v333_v48 }
  0xc2   : > { %321 = vst [vmem:[%s570_s4] sm:$0x1] %v320_v53  ;;  %v336_v55 = vadd.f32 %v335_v54, %v322_v52 }
  0xc4   : > { %337 = vst [vmem:[%s571_s5] sm:$0x1] %v336_v55 }
  0xc5 PF: > { %s16_s18 = sadd.s32 1, %s479_s18  }
  0xc6   : > { %p13_p5 = scmp.ge.s32.totalorder %s16_s18, 6  }
  0xc8   :  { %15 = sbr.rel (!%p13_p5) target bundleno = 1 (0x1), region = 82 }

</bundles_post_ra>
